<compile_context>
chip_gen: v7x
topology: tpu7x:2x2x1
jax: 0.10.0
libtpu: 0.0.40
codegen_flags: <defaults>
</compile_context>

<pallas_src>
import functools

import jax
import jax.numpy as jnp
from jax.experimental import pallas as pl
from jax.experimental.pallas import tpu as pltpu


# --------------------------------------------------------------------------
# Pallas kernel (elementwise dtype conversion, optional integer rescale)
# --------------------------------------------------------------------------
def _scale_cast_kernel(x_ref, o_ref, *, scale):
    # Widen to f32 first so scaling is exact even for fp16/bf16 output dtypes.
    x = x_ref[...].astype(jnp.float32)
    if scale is not None:          # Python-level constant at trace time
        x = x * scale
    o_ref[...] = x.astype(o_ref.dtype)


# --------------------------------------------------------------------------
# Slab / tiling helpers
# --------------------------------------------------------------------------
_MIN_LANES = 128
_ROW_ALIGN = 32                    # u8 packs 4x along sublanes -> 32-row tiles
_TARGET_BLOCK_ELEMS = 1 << 21      # ~2M elems: ~10 MiB per block, ~20 MiB double-buffered
_MIN_PALLAS_ELEMS = 1 << 18        # below this, pallas_call dispatch dominates


def _slab_lanes(n):
    """Widest lane count in {1024, 512, 256, 128} dividing n, else None."""
    for lanes in (1024, 512, 256, 128):
        if n % lanes == 0:
            return lanes
    return None


def _choose_block_rows(rows, lanes):
    """Multiple-of-32 row tile sized to ~_TARGET_BLOCK_ELEMS elements."""
    br = max(_ROW_ALIGN, (_TARGET_BLOCK_ELEMS // lanes) // _ROW_ALIGN * _ROW_ALIGN)
    if rows <= br:
        # Whole array fits in one block.  If the row count allows an aligned
        # split, use >=2 grid steps so the "parallel" axis keeps both v7x
        # TensorCores busy; one extra ~0.35 us step is noise at these sizes.
        if rows >= 2 * _ROW_ALIGN:
            half = (((rows + 1) // 2) + _ROW_ALIGN - 1) // _ROW_ALIGN * _ROW_ALIGN
            if half < rows:
                return half
        return rows                # single block == full extent (always legal)
    return br


def _jax_convert(x, dtype, scale):
    """Fused pure-JAX fallback (XLA does this in one HBM pass)."""
    if scale is None:
        return x.astype(dtype)
    return (x.astype(jnp.float32) * scale).astype(dtype)


# --------------------------------------------------------------------------
# Wrapper
# --------------------------------------------------------------------------
def convert_image_dtype(x, dtype=jnp.float32, *, min_pallas_elems=_MIN_PALLAS_ELEMS):
    """Pallas implementation of torchvision F.convert_image_dtype for the
    int->float and float->float paths."""
    assert jnp.issubdtype(dtype, jnp.floating), \
        "this kernel implements conversion TO float dtypes"
    # TODO(synk): float->int and int->int paths of convert_image_dtype are not
    # implemented (the module is used with a float target dtype).

    if jnp.issubdtype(x.dtype, jnp.integer):
        scale = 1.0 / float(jnp.iinfo(x.dtype).max)
    else:
        if x.dtype == dtype:
            return x               # identity: skip everything
        scale = None

    n = x.size
    lanes = _slab_lanes(n)
    # Tiny arrays (e.g. the label) or non-128-divisible sizes: pure-JAX fused
    # convert.  Avoids pallas_call dispatch overhead and the pad/slice path
    # that would triple HBM traffic.
    if lanes is None or n < min_pallas_elems:
        return _jax_convert(x, dtype, scale)

    rows = n // lanes
    slab = x.reshape(rows, lanes)

    block_rows = _choose_block_rows(rows, lanes)
    grid = (pl.cdiv(rows, block_rows),)   # partial last block handled by Pallas

    kernel = functools.partial(_scale_cast_kernel, scale=scale)

    out_slab = pl.pallas_call(
        kernel,
        out_shape=jax.ShapeDtypeStruct((rows, lanes), dtype),
        grid_spec=pltpu.PrefetchScalarGridSpec(
            num_scalar_prefetch=0,
            grid=grid,
            in_specs=[pl.BlockSpec((block_rows, lanes), lambda i: (i, 0))],
            out_specs=pl.BlockSpec((block_rows, lanes), lambda i: (i, 0)),
        ),
        compiler_params=pltpu.CompilerParams(
            dimension_semantics=("parallel",),   # shard steps across TCs on v7x
            vmem_limit_bytes=48 * 1024 * 1024,   # headroom for 2M-elem blocks
        ),
    )(slab)

    return out_slab.reshape(x.shape)


class ConvertImageDtype:
    """JAX/Pallas equivalent of the PyTorch ConvertImageDtype module."""

    def __init__(self, dtype=jnp.float32):
        self.dtype = dtype

    def __call__(self, sample):
        sample = dict(sample)
        # The label (and any tiny field) is handled by the fused pure-JAX path
        # inside convert_image_dtype, so only the image pays a Pallas launch.
        # For maximum throughput, batch many samples and call
        # convert_image_dtype once on the stacked batch (amortizes dispatch).
        sample['image'] = convert_image_dtype(sample['image'], self.dtype)
        sample['label'] = convert_image_dtype(sample['label'], self.dtype)
        return sample


# --------------------------------------------------------------------------
# Reference (pure JAX) for sanity checking
# --------------------------------------------------------------------------
def _ref_convert(x, dtype=jnp.float32):
    if jnp.issubdtype(x.dtype, jnp.integer):
        return (x.astype(jnp.float32) / float(jnp.iinfo(x.dtype).max)).astype(dtype)
    return x.astype(dtype)


if __name__ == "__main__":
    key = jax.random.PRNGKey(0)
    k_img, k_lbl = jax.random.split(key)

    # NCHW, small shapes: image [2, 4, 16, 16] uint8, label [2, 1, 16, 16] uint8
    image = jax.random.randint(k_img, (2, 4, 16, 16), 0, 256, dtype=jnp.int32).astype(jnp.uint8)
    label = jax.random.randint(k_lbl, (2, 1, 16, 16), 0, 256, dtype=jnp.int32).astype(jnp.uint8)

    sample = {'image': image, 'label': label}

    # Module-level path (tiny inputs take the fused pure-JAX shortcut).
    transform = ConvertImageDtype(jnp.float32)
    out = transform(sample)
    jax.block_until_ready(out['image'])
    jax.block_until_ready(out['label'])

    # Force the Pallas kernel path once (threshold override) to exercise it.
    pallas_img = convert_image_dtype(image, jnp.float32, min_pallas_elems=0)
    jax.block_until_ready(pallas_img)

    # correctness checks vs pure-JAX reference
    ref_img = _ref_convert(image, jnp.float32)
    ref_lbl = _ref_convert(label, jnp.float32)
    assert out['image'].dtype == jnp.float32
    assert out['label'].dtype == jnp.float32
    assert out['image'].shape == image.shape
    assert out['label'].shape == label.shape
    assert jnp.allclose(out['image'], ref_img, atol=1e-6)
    assert jnp.allclose(out['label'], ref_lbl, atol=1e-6)
    assert pallas_img.dtype == jnp.float32
    assert pallas_img.shape == image.shape
    assert jnp.allclose(pallas_img, ref_img, atol=1e-6)

    print("KERNEL_OK")
</pallas_src>

<mosaic_0001>
module attributes {stable_mosaic.version = 11 : i64} {
  func.func @_scale_cast_kernel(%arg0: i32, %arg1: memref<2x1024xi8, #tpu.memory_space<vmem>>, %arg2: memref<2x1024xf32, #tpu.memory_space<vmem>>) attributes {dimension_semantics = [#tpu.dimension_semantics<parallel>], iteration_bounds = array<i64: 1>, scalar_prefetch = 0 : i64, scratch_operands = 0 : i64, tpu.core_type = #tpu.core_type<tc>, window_params = [{transform_indices = @transform_0, window_bounds = array<i64: 2, 1024>}, {transform_indices = @transform_1, window_bounds = array<i64: 2, 1024>}]} {
    %c0 = arith.constant 0 : index
    %c0_0 = arith.constant 0 : index
    %0 = vector.load %arg1[%c0, %c0_0] : memref<2x1024xi8, #tpu.memory_space<vmem>>, vector<2x1024xi8>
    %1 = arith.uitofp %0 : vector<2x1024xi8> to vector<2x1024xf32>
    %cst = arith.constant 0.00392156886 : f32
    %2 = vector.broadcast %cst : f32 to vector<2x1024xf32>
    %3 = arith.mulf %1, %2 : vector<2x1024xf32>
    %c0_1 = arith.constant 0 : index
    %c0_2 = arith.constant 0 : index
    %4 = vector.load %arg2[%c0_1, %c0_2] : memref<2x1024xf32, #tpu.memory_space<vmem>>, vector<2x1024xf32>
    tpu.vector_store %arg2[%c0_1, %c0_2], %3 {strides = array<i32>} : memref<2x1024xf32, #tpu.memory_space<vmem>>, vector<2x1024xf32>,
    return
  }
  func.func @transform_0(%arg0: i32) -> (i32, i32) {
    %c0_i32 = arith.constant 0 : i32
    %c0_i32_0 = arith.constant 0 : i32
    return %arg0, %c0_i32 : i32, i32
  }
  func.func @transform_1(%arg0: i32) -> (i32, i32) {
    %c0_i32 = arith.constant 0 : i32
    %c0_i32_0 = arith.constant 0 : i32
    return %arg0, %c0_i32 : i32, i32
  }
}

</mosaic_0001>

<bundles_post_ra>
// kernel: tpu_custom_call.1
= control target key start
LH: loop header
LB: loop body
LE: loop exit
PB: predicated region body
PF: predicated region fallthrough
CT: control target
= control target key end

     0   :  { %6 = vsyncpa [#allocation3], 0  ;;  %s179_s0 = inlined_call_operand.hbm [shape: u8[2,1024], index: 0, kind: input, shape index: {}]   ;;  %s180_s1 = inlined_call_operand.hbm [shape: f32[2,1024], index: 1, kind: output, shape index: {}]  }
   0x1   :  { %7 = vsyncpa [#allocation4], 0  ;;  %s142_s6 = smov [#allocation2]   ;;  %s94_s10 = scalar_lea.hbm %s179_s0, 128 }
   0x2   :  { %s14_s7 = sshll.u32 %s142_s6, 4  ;;  %p95_p0 = scmp.ne.s32.totalorder %s179_s0, %s94_s10  ;;  %s15_s7 = int_to_ptr.vmem [resolvable:$true] %s14_s7 }
   0x3   :  { %p98_p1 = scmp.lt.u32.totalorder %s94_s10, %s179_s0 }
   0x5   :  { %p100_p2 = pnand %p98_p1, %p95_p0 }
   0x7   :  { %103 = shalt.err (!%p100_p2)
}
   0x8   :  { %s104_s15 = scalar_lea.vmem %s15_s7, 128  ;;  %p109_p4 = scmp.lt.s32.totalorder %s15_s7, %s15_s7 }
   0x9   :  { %p105_p3 = scmp.ne.s32.totalorder %s15_s7, %s104_s15  ;;  %p110_p5 = scmp.lt.s32.totalorder %s104_s15, %s104_s15 }
   0xb   :  { %p111_p6 = por %p110_p5, %p109_p4 }
   0xd   :  { %p112_p7 = pnand %p111_p6, %p105_p3 }
   0xf   :  { %115 = shalt.err (!%p112_p7)
}
  0x10   :  { %17 = dma.hbm_to_vmem [thread:$0]  %s179_s0, 128, %s15_s7, [#allocation3]  }
  0x11   :  { %138 = dma.done.wait [#allocation3], 128  }
  0x12   :  { %139 = vsyncadd [#allocation3], 4294967168  ;;  %v143_v0 = vmov 1983009808   ;;  %v45_v2 = vlaneseq  ;;  %v21_v3 = vld [vmem:[#allocation2] sm:$0xff]  ;;  %s144_s0 = smov [#allocation5]  }
  0x13   :  { %v43_v1 = vunpack.c.l.s4 %v143_v0  ;;  %v22_v6 = vunpack.c.0.s8 %v21_v3  ;;  %v23_v7 = vunpack.c.1.s8 %v21_v3  ;;  %v24_v8 = vunpack.c.2.s8 %v21_v3  ;;  %s82_s18 = sshll.u32 %s144_s0, 4  ;;  %s83_s18 = int_to_ptr.vmem [resolvable:$true] %s82_s18 }
  0x14   :  { %v46_v5 = vshrl.u32 %v45_v2, 7  ;;  %v25_v9 = vunpack.c.3.s8 %v21_v3  ;;  %s116_s19 = scalar_lea.vmem %s83_s18, 256  ;;  %p121_p9 = scmp.lt.s32.totalorder %s83_s18, %s83_s18 }
  0x15   :  { %v44_v4 = vunpack.c.0.s8 %v43_v1  ;;  %v26_v10 = vand.u32 255, %v22_v6  ;;  %v27_v11 = vand.u32 255, %v23_v7  ;;  %v28_v12 = vand.u32 255, %v24_v8  ;;  %p117_p8 = scmp.ne.s32.totalorder %s83_s18, %s116_s19  ;;  %p122_p10 = scmp.lt.s32.totalorder %s116_s19, %s116_s19 }
  0x16   :  { %v29_v13 = vand.u32 255, %v25_v9 }
  0x17   :  { %v47_v14 = vsub.s32 %v44_v4, %v46_v5  ;;  %v30_v15 = vcvt.s32.f32 %v26_v10  ;;  %v31_v16 = vcvt.s32.f32 %v27_v11  ;;  %v32_v17 = vcvt.s32.f32 %v28_v12  ;;  %p123_p11 = por %p122_p10, %p121_p9 }
  0x18   :  { %v33_v18 = vcvt.s32.f32 %v29_v13 }
  0x19   :  { %v34_v19 = vmul.f32 0.003921569, %v30_v15  ;;  %v35_v20 = vmul.f32 0.003921569, %v31_v16  ;;  %v36_v21 = vmul.f32 0.003921569, %v32_v17  ;;  %p124_p12 = pnand %p123_p11, %p117_p8 }
  0x1a   :  { %v37_v22 = vmul.f32 0.003921569, %v33_v18 }
  0x1b   :  { %v48_v23 = vrot.slane %v34_v19, %v47_v14  ;;  %v55_v24 = vrot.slane %v35_v20, %v47_v14  ;;  %v63_v25 = vrot.slane %v36_v21, %v47_v14 }
  0x1c   :  { %v70_v26 = vrot.slane %v37_v22, %v47_v14 }
  0x1d   :  { %v56_v27 = vcombine.low %v48_v23, %v55_v24 }
  0x1e   :  { %v71_v28 = vcombine.low %v63_v25, %v70_v26 }
  0x1f   :  { %74 = vst [vmem:[#allocation5] sm:$0xff] %v56_v27 }
  0x20   :  { %75 = vst [vmem:[#allocation5 + $0x8] sm:$0xff] %v71_v28 }
  0x21   :  { %127 = shalt.err (!%p124_p12)
}
  0x22   :  { %s128_s22 = scalar_lea.hbm %s180_s1, 256 }
  0x23   :  { %p129_p13 = scmp.ne.s32.totalorder %s180_s1, %s128_s22  ;;  %p132_p0 = scmp.lt.u32.totalorder %s128_s22, %s180_s1 }
  0x25   :  { %p134_p1 = pnand %p132_p0, %p129_p13 }
  0x27   :  { %137 = shalt.err (!%p134_p1)
}
  0x28   :  { %85 = dma.vmem_to_hbm [thread:$0]  %s83_s18, 256, %s180_s1, [#allocation4]  }
  0x29   :  { %140 = dma.done.wait [#allocation4], 256  }
  0x2a   :  { %141 = vsyncadd [#allocation4], 4294967040 }
  0x2b   :  { %89 = vsyncpa [#allocation3], 1 }
  0x2c   :  { %90 = vsyncpa [#allocation4], 1 }

</bundles_post_ra>
